<compile_context>
chip_gen: v7x
topology: tpu7x:2x2x1
jax: 0.10.0
libtpu: 0.0.40
codegen_flags: <defaults>
</compile_context>

<pallas_src>
import functools

import jax
import jax.numpy as jnp
from jax import lax
from jax.experimental import pallas as pl
from jax.experimental.pallas import tpu as pltpu


def _tnet_kernel(x_ref, w1t_ref, b1_ref, w2t_ref, b2_ref, w3_ref, b3_ref,
                 out_ref, pool_ref, *, n_points, needs_mask):
    """One (batch-tile, point-chunk) grid step.

    Layouts (feature-major, lane-dense):
      x_ref    : (tb, k, tn)    f32   points on lanes
      w1t_ref  : (hidden, k)    f32
      b1_ref   : (hidden, 1)    f32
      w2t_ref  : (out, hidden)  mxu dtype
      b2_ref   : (out, 1)       f32
      w3_ref   : (out, k*k)     mxu dtype
      b3_ref   : (1, k*k)       f32   (identity already folded in)
      out_ref  : (tb, k*k)      f32   (leading tile dim squeezed)
      pool_ref : (out, tb)      f32   running max over point chunks
    """
    nb = pl.program_id(1)                       # point-chunk index ("arbitrary")
    tb, k, tn = x_ref.shape

    @pl.when(nb == 0)
    def _():
        pool_ref[...] = jnp.full(pool_ref.shape, -jnp.inf, jnp.float32)

    # Hoisted weight / bias loads (tiny, reused across the unrolled batch loop).
    w1t = w1t_ref[...]
    b1 = b1_ref[...]
    w2t = w2t_ref[...]
    b2 = b2_ref[...]

    if needs_mask:
        # Only the last point chunk can be ragged; for full chunks the limit
        # is >= tn so the select is a no-op.  Computed once per grid step as a
        # (1, tn) lane mask (not per batch, not (tb, tn, out)).
        lane = lax.broadcasted_iota(jnp.int32, (1, tn), 1)
        lane_ok = lane < (n_points - nb * tn)

    for b in range(tb):                          # tb is small and static -> unrolled
        x_b = x_ref[b]                           # (k, tn) f32

        # Layer 1: Linear(k, 32) + ReLU as k VPU broadcast-MACs.  K = k = 4
        # would use <2% of the MXU contraction dim, so keep it on the VPU.
        h1 = b1                                  # (hidden, 1) -> broadcasts below
        for c in range(k):
            h1 = h1 + w1t[:, c:c + 1] * x_b[c:c + 1, :]
        h1 = jnp.maximum(h1, 0.0)                # (hidden, tn) f32

        # Layer 2: Linear(32, out) + ReLU on the MXU, points dense on lanes.
        h2 = jnp.dot(w2t, h1.astype(w2t.dtype),
                     preferred_element_type=jnp.float32)
        h2 = jnp.maximum(h2 + b2, 0.0)           # (out, tn) f32

        if needs_mask:
            h2 = jnp.where(lane_ok, h2, -jnp.inf)

        # torch.max over the points axis == lane-axis reduce; fold into the
        # running max column for this batch.
        col = jnp.max(h2, axis=-1, keepdims=True)                 # (out, 1)
        pool_ref[:, b:b + 1] = jnp.maximum(pool_ref[:, b:b + 1], col)

    @pl.when(nb == pl.num_programs(1) - 1)
    def _():
        # fc: Linear(out, k*k).  pooled is (out, tb); contract dim 0 of both
        # operands so the result lands directly as (tb, k*k) -- no transpose.
        pooled = pool_ref[...].astype(w3_ref.dtype)
        o = lax.dot_general(pooled, w3_ref[...],
                            dimension_numbers=(((0,), (0,)), ((), ())),
                            preferred_element_type=jnp.float32)
        out_ref[...] = (o + b3_ref[...]).astype(out_ref.dtype)


def tnet_forward(x, params, *, mxu_dtype=jnp.float32, tn_max=512,
                 feature_major=False):
    """TNet forward.

    x: (B, N, k) f32 (PyTorch layout), or (B, k, N) if feature_major=True.
    params: w1 (k,hidden), b1 (hidden,), w2 (hidden,out), b2 (out,),
            w3 (out, k*k), b3 (k*k,)   -- all in (in, out) orientation.
    Returns (B, k, k) f32.
    """
    if feature_major:
        B, k, N = x.shape
        xt = x
    else:
        B, N, k = x.shape
        # Single transpose to the lane-dense feature-major layout; x stays f32
        # (no cast / pad passes over x).
        # TODO(synk): have the upstream producer emit (B, k, N) directly so
        # this wrapper pass disappears.
        xt = jnp.swapaxes(x, 1, 2)

    w1, b1 = params["w1"], params["b1"]
    w2, b2 = params["w2"], params["b2"]
    w3, b3 = params["w3"], params["b3"]
    hidden = w1.shape[1]
    out_size = w2.shape[1]
    kk = w3.shape[1]
    assert kk == k * k

    # Weight prep (tiny, one-time).  Layer 1 and all biases stay f32 (VPU
    # work); only the two MXU operands are optionally cast to mxu_dtype.
    w1t = jnp.asarray(w1, jnp.float32).T                      # (hidden, k)
    b1c = jnp.asarray(b1, jnp.float32).reshape(hidden, 1)
    w2t = jnp.asarray(w2, mxu_dtype).T                        # (out, hidden)
    b2c = jnp.asarray(b2, jnp.float32).reshape(out_size, 1)
    w3c = jnp.asarray(w3, mxu_dtype)                          # (out, kk)
    b3c = (jnp.asarray(b3, jnp.float32).reshape(1, kk)
           + jnp.eye(k, dtype=jnp.float32).reshape(1, kk))    # fold +I_k

    # Point-chunk size: whole N if small, else lane-aligned (multiple of 128).
    if N <= tn_max:
        tn = N
    else:
        tn = max(128, (tn_max // 128) * 128)
    n_chunks = pl.cdiv(N, tn)
    needs_mask = (N % tn) != 0

    # Batch tile: <= ceil(B/2) so the "parallel" batch axis has >= 2 tiles
    # (keeps both v7x TensorCores busy), capped at 8.  No batch padding: a
    # ragged last tile reads garbage rows that are discarded below.
    tb = max(1, min(8, -(-B // 2)))
    n_tiles = pl.cdiv(B, tb)
    grid = (n_tiles, n_chunks)

    kernel = functools.partial(_tnet_kernel, n_points=N, needs_mask=needs_mask)

    x_index_map = lambda b, n: (b, 0, n)
    if n_chunks > 1:
        # Per-chunk compute is tiny -> chunk DMA is latency exposed; deepen
        # the input pipeline a little (fall back silently if unsupported).
        try:
            x_spec = pl.BlockSpec((tb, k, tn), x_index_map,
                                  pipeline_mode=pl.Buffered(3))
        except (AttributeError, TypeError):
            x_spec = pl.BlockSpec((tb, k, tn), x_index_map)
    else:
        x_spec = pl.BlockSpec((tb, k, tn), x_index_map)

    def full2d(a):
        return pl.BlockSpec(a.shape, lambda b, n: (0, 0))

    out = pl.pallas_call(
        kernel,
        out_shape=jax.ShapeDtypeStruct((n_tiles, tb, kk), jnp.float32),
        grid_spec=pltpu.PrefetchScalarGridSpec(
            num_scalar_prefetch=0,
            grid=grid,
            in_specs=[
                x_spec,
                full2d(w1t), full2d(b1c),
                full2d(w2t), full2d(b2c),
                full2d(w3c), full2d(b3c),
            ],
            # Lane-flat (tb, k*k) output block, resident across point chunks;
            # leading tile dim squeezed out of the kernel ref.
            out_specs=pl.BlockSpec((None, tb, kk), lambda b, n: (b, 0, 0)),
            scratch_shapes=[pltpu.VMEM((out_size, tb), jnp.float32)],
        ),
        # All tiles are <1 MiB: fits v5e's 16 MiB scoped-VMEM default and
        # v7x's 64 MiB physical VMEM with headroom, so no vmem_limit_bytes.
        compiler_params=pltpu.CompilerParams(
            dimension_semantics=("parallel", "arbitrary")),
    )(xt, w1t, b1c, w2t, b2c, w3c, b3c)

    return out.reshape(n_tiles * tb, kk)[:B].reshape(B, k, k)


def init_params(key, k, hidden, out_size):
    ks = jax.random.split(key, 6)
    scale = 0.1
    return {
        "w1": scale * jax.random.normal(ks[0], (k, hidden), jnp.float32),
        "b1": scale * jax.random.normal(ks[1], (hidden,), jnp.float32),
        "w2": scale * jax.random.normal(ks[2], (hidden, out_size), jnp.float32),
        "b2": scale * jax.random.normal(ks[3], (out_size,), jnp.float32),
        "w3": scale * jax.random.normal(ks[4], (out_size, k * k), jnp.float32),
        "b3": scale * jax.random.normal(ks[5], (k * k,), jnp.float32),
    }


def tnet_reference(x, params):
    """Pure-JAX reference mirroring the PyTorch forward exactly (f32)."""
    B, N, k = x.shape
    h = jnp.maximum(x @ params["w1"] + params["b1"], 0.0)
    h = jnp.maximum(h @ params["w2"] + params["b2"], 0.0)
    pooled = jnp.max(h, axis=1)                   # (B, out_size)
    o = pooled @ params["w3"] + params["b3"]      # (B, k*k)
    return o.reshape(B, k, k) + jnp.eye(k, dtype=o.dtype)


if __name__ == "__main__":
    key = jax.random.PRNGKey(0)

    # Small TNet(k=4): batch=2, 8 points, hidden=32, out_size=32.
    B, N, k = 2, 8, 4
    hidden, out_size = 32, 32
    kx, kp = jax.random.split(key)
    x = jax.random.normal(kx, (B, N, k), jnp.float32)
    params = init_params(kp, k, hidden, out_size)
    ref = tnet_reference(x, params)

    # f32 path (default): matches the f32 reference tightly.
    out_f32 = jax.block_until_ready(tnet_forward(x, params, mxu_dtype=jnp.float32))
    assert out_f32.shape == (B, k, k)
    assert jnp.allclose(out_f32, ref, atol=1e-4, rtol=1e-4), "f32 mismatch vs reference"

    # Optional bf16-operand MXU path (f32 accumulation).
    out_bf16 = jax.block_until_ready(tnet_forward(x, params, mxu_dtype=jnp.bfloat16))
    assert out_bf16.shape == (B, k, k)
    assert jnp.allclose(out_bf16, ref, atol=3e-2, rtol=3e-2), "bf16 mismatch vs reference"

    # Larger case: module-default out_size=256, point chunking, ragged point
    # tail (640 % 512 != 0) and ragged batch tile (5 batches, tb=3).
    B2, N2 = 5, 640
    kx2, kp2 = jax.random.split(jax.random.PRNGKey(1))
    x2 = jax.random.normal(kx2, (B2, N2, k), jnp.float32)
    params2 = init_params(kp2, k, hidden, 256)
    ref2 = tnet_reference(x2, params2)
    out2 = jax.block_until_ready(
        tnet_forward(x2, params2, mxu_dtype=jnp.float32, tn_max=512))
    assert out2.shape == (B2, k, k)
    assert jnp.allclose(out2, ref2, atol=1e-3, rtol=1e-3), "chunked mismatch vs reference"

    print("KERNEL_OK")
</pallas_src>

<mosaic_0001>
module attributes {stable_mosaic.version = 11 : i64} {
  func.func @_tnet_kernel(%arg0: i32, %arg1: i32, %arg2: memref<1x4x8xf32, #tpu.memory_space<vmem>>, %arg3: memref<32x4xf32, #tpu.memory_space<vmem>>, %arg4: memref<32x1xf32, #tpu.memory_space<vmem>>, %arg5: memref<32x32xf32, #tpu.memory_space<vmem>>, %arg6: memref<32x1xf32, #tpu.memory_space<vmem>>, %arg7: memref<32x16xf32, #tpu.memory_space<vmem>>, %arg8: memref<1x16xf32, #tpu.memory_space<vmem>>, %arg9: memref<1x1x16xf32, #tpu.memory_space<vmem>>, %arg10: memref<32x1xf32, #tpu.memory_space<vmem>>) attributes {dimension_semantics = [#tpu.dimension_semantics<parallel>, #tpu.dimension_semantics<arbitrary>], iteration_bounds = array<i64: 2, 1>, scalar_prefetch = 0 : i64, scratch_operands = 1 : i64, tpu.core_type = #tpu.core_type<tc>, window_params = [{transform_indices = @transform_0, window_bounds = array<i64: 1, 4, 8>}, {pipeline_mode = #tpu.pipeline_mode<synchronous>, transform_indices = @transform_1, window_bounds = array<i64: 32, 4>}, {pipeline_mode = #tpu.pipeline_mode<synchronous>, transform_indices = @transform_2, window_bounds = array<i64: 32, 1>}, {pipeline_mode = #tpu.pipeline_mode<synchronous>, transform_indices = @transform_3, window_bounds = array<i64: 32, 32>}, {pipeline_mode = #tpu.pipeline_mode<synchronous>, transform_indices = @transform_4, window_bounds = array<i64: 32, 1>}, {pipeline_mode = #tpu.pipeline_mode<synchronous>, transform_indices = @transform_5, window_bounds = array<i64: 32, 16>}, {pipeline_mode = #tpu.pipeline_mode<synchronous>, transform_indices = @transform_6, window_bounds = array<i64: 1, 16>}, {transform_indices = @transform_7, window_bounds = array<i64: 1, 1, 16>}]} {
    %c0_i32 = arith.constant 0 : i32
    %0 = arith.cmpi eq, %arg1, %c0_i32 : i32
    %1 = arith.extui %0 : i1 to i32
    %c0_i32_0 = arith.constant 0 : i32
    %2 = arith.cmpi ne, %1, %c0_i32_0 : i32
    scf.if %2 {
      %cst_20 = arith.constant 0xFF800000 : f32
      %49 = vector.broadcast %cst_20 : f32 to vector<32x1xf32>
      %c0_21 = arith.constant 0 : index
      %c0_22 = arith.constant 0 : index
      %50 = vector.load %arg10[%c0_21, %c0_22] : memref<32x1xf32, #tpu.memory_space<vmem>>, vector<32x1xf32>
      tpu.vector_store %arg10[%c0_21, %c0_22], %49 {strides = array<i32>} : memref<32x1xf32, #tpu.memory_space<vmem>>, vector<32x1xf32>,
    } else {
    }
    %c0 = arith.constant 0 : index
    %c0_1 = arith.constant 0 : index
    %3 = vector.load %arg3[%c0, %c0_1] : memref<32x4xf32, #tpu.memory_space<vmem>>, vector<32x4xf32>
    %c0_2 = arith.constant 0 : index
    %c0_3 = arith.constant 0 : index
    %4 = vector.load %arg4[%c0_2, %c0_3] : memref<32x1xf32, #tpu.memory_space<vmem>>, vector<32x1xf32>
    %c0_4 = arith.constant 0 : index
    %c0_5 = arith.constant 0 : index
    %5 = vector.load %arg5[%c0_4, %c0_5] : memref<32x32xf32, #tpu.memory_space<vmem>>, vector<32x32xf32>
    %c0_6 = arith.constant 0 : index
    %c0_7 = arith.constant 0 : index
    %6 = vector.load %arg6[%c0_6, %c0_7] : memref<32x1xf32, #tpu.memory_space<vmem>>, vector<32x1xf32>
    %c0_8 = arith.constant 0 : index
    %c0_9 = arith.constant 0 : index
    %c0_10 = arith.constant 0 : index
    %7 = vector.load %arg2[%c0_8, %c0_9, %c0_10] : memref<1x4x8xf32, #tpu.memory_space<vmem>>, vector<1x4x8xf32>
    %8 = vector.shape_cast %7 : vector<1x4x8xf32> to vector<4x8xf32>
    %9 = vector.extract_strided_slice %3 {offsets = [0, 0], sizes = [32, 1], strides = [1, 1]} : vector<32x4xf32> to vector<32x1xf32>
    %10 = vector.extract_strided_slice %8 {offsets = [0, 0], sizes = [1, 8], strides = [1, 1]} : vector<4x8xf32> to vector<1x8xf32>
    %11 = vector.broadcast %9 : vector<32x1xf32> to vector<32x8xf32>
    %12 = vector.broadcast %10 : vector<1x8xf32> to vector<32x8xf32>
    %13 = arith.mulf %11, %12 : vector<32x8xf32>
    %14 = vector.broadcast %4 : vector<32x1xf32> to vector<32x8xf32>
    %15 = arith.addf %14, %13 : vector<32x8xf32>
    %16 = vector.extract_strided_slice %3 {offsets = [0, 1], sizes = [32, 1], strides = [1, 1]} : vector<32x4xf32> to vector<32x1xf32>
    %17 = vector.extract_strided_slice %8 {offsets = [1, 0], sizes = [1, 8], strides = [1, 1]} : vector<4x8xf32> to vector<1x8xf32>
    %18 = vector.broadcast %16 : vector<32x1xf32> to vector<32x8xf32>
    %19 = vector.broadcast %17 : vector<1x8xf32> to vector<32x8xf32>
    %20 = arith.mulf %18, %19 : vector<32x8xf32>
    %21 = arith.addf %15, %20 : vector<32x8xf32>
    %22 = vector.extract_strided_slice %3 {offsets = [0, 2], sizes = [32, 1], strides = [1, 1]} : vector<32x4xf32> to vector<32x1xf32>
    %23 = vector.extract_strided_slice %8 {offsets = [2, 0], sizes = [1, 8], strides = [1, 1]} : vector<4x8xf32> to vector<1x8xf32>
    %24 = vector.broadcast %22 : vector<32x1xf32> to vector<32x8xf32>
    %25 = vector.broadcast %23 : vector<1x8xf32> to vector<32x8xf32>
    %26 = arith.mulf %24, %25 : vector<32x8xf32>
    %27 = arith.addf %21, %26 : vector<32x8xf32>
    %28 = vector.extract_strided_slice %3 {offsets = [0, 3], sizes = [32, 1], strides = [1, 1]} : vector<32x4xf32> to vector<32x1xf32>
    %29 = vector.extract_strided_slice %8 {offsets = [3, 0], sizes = [1, 8], strides = [1, 1]} : vector<4x8xf32> to vector<1x8xf32>
    %30 = vector.broadcast %28 : vector<32x1xf32> to vector<32x8xf32>
    %31 = vector.broadcast %29 : vector<1x8xf32> to vector<32x8xf32>
    %32 = arith.mulf %30, %31 : vector<32x8xf32>
    %33 = arith.addf %27, %32 : vector<32x8xf32>
    %cst = arith.constant 0.000000e+00 : f32
    %34 = vector.broadcast %cst : f32 to vector<32x8xf32>
    %35 = arith.maximumf %33, %34 : vector<32x8xf32>
    %cst_11 = arith.constant dense<0.000000e+00> : vector<32x8xf32>
    %36 = tpu.matmul %5, %35, %cst_11 {dimension_numbers = #tpu.dot_dimension_numbers<[1], [0], [0], [1], [0, 0, 1, 1], [], []>} : vector<32x32xf32>, vector<32x8xf32>, vector<32x8xf32> -> vector<32x8xf32>
    %37 = vector.broadcast %6 : vector<32x1xf32> to vector<32x8xf32>
    %38 = arith.addf %36, %37 : vector<32x8xf32>
    %cst_12 = arith.constant 0.000000e+00 : f32
    %39 = vector.broadcast %cst_12 : f32 to vector<32x8xf32>
    %40 = arith.maximumf %38, %39 : vector<32x8xf32>
    %cst_13 = arith.constant dense<0xFF800000> : vector<32xf32>
    %41 = vector.multi_reduction <maximumf>, %40, %cst_13 [1] : vector<32x8xf32> to vector<32xf32>
    %42 = vector.shape_cast %41 : vector<32xf32> to vector<32x1xf32>
    %c0_14 = arith.constant 0 : index
    %c0_15 = arith.constant 0 : index
    %43 = vector.load %arg10[%c0_14, %c0_15] : memref<32x1xf32, #tpu.memory_space<vmem>>, vector<32x1xf32>
    %44 = arith.maximumf %43, %42 : vector<32x1xf32>
    %c0_16 = arith.constant 0 : index
    %c0_17 = arith.constant 0 : index
    %45 = vector.load %arg10[%c0_16, %c0_17] : memref<32x1xf32, #tpu.memory_space<vmem>>, vector<32x1xf32>
    tpu.vector_store %arg10[%c0_16, %c0_17], %44 {strides = array<i32>} : memref<32x1xf32, #tpu.memory_space<vmem>>, vector<32x1xf32>,
    %c0_i32_18 = arith.constant 0 : i32
    %46 = arith.cmpi eq, %arg1, %c0_i32_18 : i32
    %47 = arith.extui %46 : i1 to i32
    %c0_i32_19 = arith.constant 0 : i32
    %48 = arith.cmpi ne, %47, %c0_i32_19 : i32
    scf.if %48 {
      %c0_20 = arith.constant 0 : index
      %c0_21 = arith.constant 0 : index
      %49 = vector.load %arg10[%c0_20, %c0_21] : memref<32x1xf32, #tpu.memory_space<vmem>>, vector<32x1xf32>
      %c0_22 = arith.constant 0 : index
      %c0_23 = arith.constant 0 : index
      %50 = vector.load %arg7[%c0_22, %c0_23] : memref<32x16xf32, #tpu.memory_space<vmem>>, vector<32x16xf32>
      %cst_24 = arith.constant dense<0.000000e+00> : vector<1x16xf32>
      %51 = tpu.matmul %49, %50, %cst_24 {dimension_numbers = #tpu.dot_dimension_numbers<[0], [0], [1], [1], [0, 1, 1, 1], [], []>} : vector<32x1xf32>, vector<32x16xf32>, vector<1x16xf32> -> vector<1x16xf32>
      %c0_25 = arith.constant 0 : index
      %c0_26 = arith.constant 0 : index
      %52 = vector.load %arg8[%c0_25, %c0_26] : memref<1x16xf32, #tpu.memory_space<vmem>>, vector<1x16xf32>
      %53 = arith.addf %51, %52 : vector<1x16xf32>
      %c0_27 = arith.constant 0 : index
      %c0_28 = arith.constant 0 : index
      %c0_29 = arith.constant 0 : index
      %54 = vector.load %arg9[%c0_27, %c0_28, %c0_29] : memref<1x1x16xf32, #tpu.memory_space<vmem>>, vector<1x1x16xf32>
      %55 = vector.shape_cast %54 : vector<1x1x16xf32> to vector<1x16xf32>
      %56 = vector.shape_cast %53 : vector<1x16xf32> to vector<1x1x16xf32>
      tpu.vector_store %arg9[%c0_27, %c0_28, %c0_29], %56 {strides = array<i32>} : memref<1x1x16xf32, #tpu.memory_space<vmem>>, vector<1x1x16xf32>,
    } else {
    }
    return
  }
  func.func @transform_0(%arg0: i32, %arg1: i32) -> (i32, i32, i32) {
    %c0_i32 = arith.constant 0 : i32
    %c0_i32_0 = arith.constant 0 : i32
    return %arg0, %c0_i32, %arg1 : i32, i32, i32
  }
  func.func @transform_1(%arg0: i32, %arg1: i32) -> (i32, i32) {
    %c0_i32 = arith.constant 0 : i32
    %c0_i32_0 = arith.constant 0 : i32
    %c0_i32_1 = arith.constant 0 : i32
    return %c0_i32, %c0_i32_0 : i32, i32
  }
  func.func @transform_2(%arg0: i32, %arg1: i32) -> (i32, i32) {
    %c0_i32 = arith.constant 0 : i32
    %c0_i32_0 = arith.constant 0 : i32
    %c0_i32_1 = arith.constant 0 : i32
    return %c0_i32, %c0_i32_0 : i32, i32
  }
  func.func @transform_3(%arg0: i32, %arg1: i32) -> (i32, i32) {
    %c0_i32 = arith.constant 0 : i32
    %c0_i32_0 = arith.constant 0 : i32
    %c0_i32_1 = arith.constant 0 : i32
    return %c0_i32, %c0_i32_0 : i32, i32
  }
  func.func @transform_4(%arg0: i32, %arg1: i32) -> (i32, i32) {
    %c0_i32 = arith.constant 0 : i32
    %c0_i32_0 = arith.constant 0 : i32
    %c0_i32_1 = arith.constant 0 : i32
    return %c0_i32, %c0_i32_0 : i32, i32
  }
  func.func @transform_5(%arg0: i32, %arg1: i32) -> (i32, i32) {
    %c0_i32 = arith.constant 0 : i32
    %c0_i32_0 = arith.constant 0 : i32
    %c0_i32_1 = arith.constant 0 : i32
    return %c0_i32, %c0_i32_0 : i32, i32
  }
  func.func @transform_6(%arg0: i32, %arg1: i32) -> (i32, i32) {
    %c0_i32 = arith.constant 0 : i32
    %c0_i32_0 = arith.constant 0 : i32
    %c0_i32_1 = arith.constant 0 : i32
    return %c0_i32, %c0_i32_0 : i32, i32
  }
  func.func @transform_7(%arg0: i32, %arg1: i32) -> (i32, i32, i32) {
    %c0_i32 = arith.constant 0 : i32
    %c0_i32_0 = arith.constant 0 : i32
    %c0_i32_1 = arith.constant 0 : i32
    return %arg0, %c0_i32, %c0_i32_0 : i32, i32, i32
  }
}

</mosaic_0001>

<bundles_post_ra>
// kernel: tpu_custom_call.1
= control target key start
LH: loop header
LB: loop body
LE: loop exit
PB: predicated region body
PF: predicated region fallthrough
CT: control target
= control target key end

     0   :  { %12 = vsyncpa [#allocation4], 0  ;;  %s1272_s0 = inlined_call_operand.vmem [shape: f32[2,4,8], index: 0, kind: input, shape index: {}]   ;;  %s1273_s1 = inlined_call_operand.vmem [shape: f32[32,4], index: 1, kind: input, shape index: {}]   ;;  %s1274_s2 = inlined_call_operand.vmem [shape: f32[32,1], index: 2, kind: input, shape index: {}]   ;;  %s1275_s3 = inlined_call_operand.vmem [shape: f32[32,32], index: 3, kind: input, shape index: {}]   ;;  %s1276_s4 = inlined_call_operand.vmem [shape: f32[32,1], index: 4, kind: input, shape index: {}]   ;;  %s1277_s5 = inlined_call_operand.vmem [shape: f32[32,16], index: 5, kind: input, shape index: {}]   ;;  %s1278_s6 = inlined_call_operand.vmem [shape: f32[1,16], index: 6, kind: input, shape index: {}]   ;;  %s1279_s7 = inlined_call_operand.hbm [shape: f32[2,1,16], index: 7, kind: output, shape index: {}]  }
   0x1   :  { %14 = vsyncpa [#allocation4 + $0x1], 0  ;;  %s1080_s24 = smov 0   ;;  %s1082_s25 = smov 0  }
   0x2   :  { %s1084_s26 = smov 0   ;;  %s1086_s27 = smov 0  }
   0x3   :  { %s1088_s28 = smov 0   ;;  %s1090_s29 = smov 0  }
   0x4 LB: > { %s808_s30 = sadd.s32 4294967295, %s1029_s29   ;;  %s809_s8 = sadd.s32 4294967294, %s1029_s29   ;;  %s1029_s29 = sphi %s1090_s29, %s20_s29   ;;  %s1025_s28 = sphi %s1088_s28, %s1286_s28   ;;  %s1021_s27 = sphi %s1086_s27, %s1285_s27   ;;  %s1017_s26 = sphi %s1084_s26, %s1284_s26   ;;  %s1013_s25 = sphi %s1082_s25, %s1283_s25   ;;  %s1009_s24 = sphi %s1080_s24, %s1282_s24  }
   0x5   : > { %s32_s9 = sadd.s32 1, %s1025_s28  ;;  %s193_s10 = sadd.s32 1, %s1017_s26 }
   0x6   : > { %p34_p0 = scmp.ge.s32.totalorder %s32_s9, 2  ;;  %p203_p1 = scmp.ne.s32.totalorder %s1017_s26, %s1013_s25 }
   0x7   : > { %p204_p2 = scmp.eq.s32.totalorder %s808_s30, 1  ;;  %p209_p3 = scmp.ne.s32.totalorder %s1013_s25, %s1009_s24 }
   0x8   : > { %s1288_s9 = smov (%p34_p0, %s32_s9), 0  ;;  %p210_p5 = scmp.eq.s32.totalorder %s809_s8, 1 }
   0x9   : > { %p1120_p4 = por %p204_p2, %p203_p1  ;;  %s190_s12 = ssub.s32 %s1025_s28, %s1288_s9 }
   0xa   : > { %p812_p6 = scmp.ge.s32.totalorder %s1029_s29, 1  ;;  %p191_p7 = scmp.eq.s32.totalorder %s190_s12, 0 }
   0xb   : > { %p1127_p8 = por %p210_p5, %p209_p3  ;;  %p256_p9 = scmp.lt.s32.totalorder %s1029_s29, 3 }
   0xc   : > { %s1133_s14 = scalar_select %p191_p7, %s1017_s26, %s193_s10  }
   0xd   : > { %p257_p10 = pnand %p812_p6, %p256_p9 }
   0xe   : > { %v309_v0 = vld [vmem:[%s1274_s2] sm:$0xff] (!%p257_p10)  ;;  %v1031_v2 = vmov (!%p257_p10), 0   ;;  %v310_v3 = vld [vmem:[%s1274_s2 + $0x8] sm:$0xff] (!%p257_p10)  ;;  %v308_v5 = vld [vmem:[%s1273_s1 + $0x18] sm:$0xff] (!%p257_p10)  ;;  %v1032_v6 = vmov (!%p257_p10), 1   ;;  %v1033_v9 = vmov (!%p257_p10), 2   ;;  %v342_v23 = vlaneseq (!%p257_p10) }
   0xf   : > { %260 = sbr.rel (%p257_p10) target bundleno = 935 (0x3a7), region = 48  ;;  %v305_v1 = vld [vmem:[%s1273_s1] sm:$0xff] (!%p257_p10)  ;;  %938 = vset.pattern.permute.xlu1 (!%p257_p10), %v1031_v2  ;;  %937 = vset.pattern.permute.xlu0 (!%p257_p10), %v1031_v2  ;;  %v306_v4 = vld [vmem:[%s1273_s1 + $0x8] sm:$0xff] (!%p257_p10)  ;;  %v311_v7 = vld [vmem:[%s1274_s2 + $0x10] sm:$0xff] (!%p257_p10)  ;;  %v1034_v10 = vmov (!%p257_p10), 3   ;;  %vm482_vm0 = vcmask (!%p257_p10), 261120  }
  0x10   : > { %352 = vperm.xlu1 (!%p257_p10), %938, %v309_v0   ;;  %324 = vperm.xlu0 (!%p257_p10), %937, %v305_v1   ;;  %v307_v8 = vld [vmem:[%s1273_s1 + $0x10] sm:$0xff] (!%p257_p10)  ;;  %v312_v11 = vld [vmem:[%s1274_s2 + $0x18] sm:$0xff] (!%p257_p10)  ;;  %v313_v12 = vld [vmem:[%s1275_s3] sm:$0xff] (!%p257_p10)  ;;  %p289_p11 = scmp.lt.s32.totalorder (!%p257_p10), %s1021_s27, 1  ;;  %v343_v26 = vshrl.u32 (!%p257_p10), %v342_v23, 7  ;;  %vm300_vm1 = vcmask (!%p257_p10), 7168  }
  0x11   : > { %843 = vmatprep.mubr.msk.f32.mxu0 (!%p257_p10), %vm482_vm0, %v313_v12  ;;  %v317_v13 = vld [vmem:[%s1276_s4] sm:$0xff] (!%p257_p10)  ;;  %v318_v14 = vld [vmem:[%s1276_s4 + $0x8] sm:$0xff] (!%p257_p10)  ;;  %v320_v15 = vld [vmem:[%s1276_s4 + $0x18] sm:$0xff] (!%p257_p10)  ;;  %vm584_vm2 = vcmask (!%p257_p10), 64512   ;;  %vm1037_vm3 = vmmov (!%p257_p10), 0   ;;  %s287_s21 = sand.u32 (!%p257_p10), 1, %s1013_s25  }
  0x12   : > { %v319_v16 = vld [vmem:[%s1276_s4 + $0x10] sm:$0xff] (!%p257_p10)  ;;  %v344_v29 = vsub.s32 (!%p257_p10), 0, %v343_v26  ;;  %v392_v30 = vsub.s32 (!%p257_p10), 1, %v343_v26  ;;  %v420_v35 = vsub.s32 (!%p257_p10), 2, %v343_v26  ;;  %v448_v38 = vsub.s32 (!%p257_p10), 3, %v343_v26  ;;  %s819_s30 = sshll.u32 (!%p257_p10), %s1021_s27, 4 }
  0x13   : > { %v315_v23 = vld [vmem:[%s1275_s3 + $0x10] sm:$0xff] (!%p257_p10)  ;;  %s288_s8 = scalar_lea.vmem (!%p257_p10), [#allocation3], %s287_s21  ;;  %vm727_vm4 = vcmask (!%p257_p10), 122880   ;;  %s730_s17 = scalar_lea.sflag (!%p257_p10), [#allocation4], %s287_s21 }
  0x14   : > { %357 = vperm.xlu1 (!%p257_p10), %938, %v310_v3   ;;  %329 = vperm.xlu0 (!%p257_p10), %937, %v306_v4   ;;  %s742_s10 = sshll.u32 (!%p257_p10), %s288_s8, 4  ;;  %s1227_s10 = int_to_ptr.vmem [resolvable:$true] %s742_s10 }
  0x15   : > { %s951_s18 = scalar_lea.vmem (!%p257_p10), %s1227_s10, 16 }
  0x16   : > { %s290_s15 = scalar_select %p289_p11, %s1021_s27, 1 }
  0x17   : > { %p952_p12 = scmp.ne.s32.totalorder %s1227_s10, %s951_s18  ;;  %s1039_s27 = smov [#allocation3]  }
  0x18   : > { %939 = vset.pattern.permute.xlu1 %v1032_v6  ;;  %339 = vperm.xlu0 %937, %v308_v5   ;;  %s813_s16 = sshll.u32 %s290_s15, 2 }
  0x19   : > { %379 = vperm.xlu1 %939, %v306_v4   ;;  %s295_s19 = scalar_lea.vmem %s1272_s0, %s813_s16  ;;  %s1225_s16 = scalar_lea.hbm %s1279_s7, %s819_s30 }
  0x1a   : > { %v321_v31 = vld [vmem:[%s295_s19] sm:$0xf]  ;;  %p953_p13 = pnand %p952_p12, %p1120_p4  ;;  %s955_s19 = sshll.u32 %s1039_s27, 4  ;;  %s956_s19 = int_to_ptr.vmem [resolvable:$false] %s955_s19 }
  0x1b   : > { %v345_v33 = vrot.slane %v321_v31, %v344_v29  ;;  %v393_v34 = vrot.slane %v321_v31, %v392_v30  ;;  %v421_v42 = vrot.slane %v321_v31, %v420_v35  ;;  %v449_v46 = vrot.slane %v321_v31, %v448_v38  ;;  %s957_s20 = scalar_lea.vmem %s956_s19, 32  ;;  %p958_p1 = scmp.lt.s32.totalorder %s1227_s10, %s956_s19 }
  0x1c   : > { %362 = vperm.xlu0 %937, %v311_v7   ;;  %p954_p0 = pneg %p953_p13  ;;  %p959_p2 = scmp.lt.s32.totalorder %s957_s20, %s951_s18 }
  0x1d   : > { %940 = vset.pattern.permute.xlu1 %v1031_v2 }
  0x1e   : > { %334 = vperm.xlu1 %940, %v307_v8   ;;  %p960_p3 = por %p959_p2, %p958_p1 }
  0x20   : > { %942 = vset.pattern.permute.xlu0 %v1032_v6  ;;  %p961_p5 = pnand %p960_p3, %p954_p0 }
  0x21   : > { %375 = vperm.xlu0 %942, %v305_v1  }
  0x22   : > { %941 = vset.pattern.permute.xlu1 %v1033_v9 }
  0x23   : > { %403 = vperm.xlu1 %941, %v305_v1  }
  0x25   : > { %383 = vperm.xlu0 %942, %v307_v8  }
  0x27   : > { %407 = vperm.xlu1 %941, %v306_v4  }
  0x29   : > { %946 = vset.pattern.permute.xlu0 %v1034_v10 }
  0x2a   : > { %435 = vperm.xlu0 %946, %v306_v4  }
  0x2b   : > { %943 = vset.pattern.permute.xlu1 %v1031_v2 }
  0x2c   : > { %367 = vperm.xlu1 %943, %v312_v11  }
  0x2e   : > { %439 = vperm.xlu0 %946, %v307_v8  }
  0x30   : > { %944 = vset.pattern.permute.xlu1 %v1032_v6 }
  0x31   : > { %387 = vperm.xlu1 %944, %v308_v5  }
  0x32   : > { %949 = vset.pattern.permute.xlu0 %v1031_v2 }
  0x33   : > { %464 = vperm.xlu0 %949, %v317_v13  }
  0x35   : > { %945 = vset.pattern.permute.xlu1 %v1034_v10 }
  0x36   : > { %431 = vperm.xlu1 %945, %v305_v1  }
  0x37   : > { %479 = vperm.xlu0 %949, %v320_v15  }
  0x3a   : > { %947 = vset.pattern.permute.xlu1 %v1033_v9 }
  0x3b   : > { %411 = vperm.xlu1 %947, %v307_v8  }
  0x3f   : > { %415 = vperm.xlu1 %947, %v308_v5  }
  0x43   : > { %948 = vset.pattern.permute.xlu1 %v1034_v10 }
  0x44   : > { %443 = vperm.xlu1 %948, %v308_v5  }
  0x48   : > { %950 = vset.pattern.permute.xlu1 %v1031_v2 }
  0x49   : > { %469 = vperm.xlu1 %950, %v318_v14  }
  0x4d   : > { %474 = vperm.xlu1 %950, %v319_v16  }
  0x8f   : > { %v353_v17 = vpop.permute.xlu1 %352  ;;  %v325_v18 = vpop.permute.xlu0 %324 }
  0x90   : > { %v346_v40 = vmul.f32 %v345_v33, %v325_v18 }
  0x92   : > { %v370_v48 = vadd.f32 %v353_v17, %v346_v40 }
  0x93   : > { %v358_v19 = vpop.permute.xlu1 %357  ;;  %v330_v20 = vpop.permute.xlu0 %329 }
  0x94   : > { %v347_v37 = vmul.f32 %v345_v33, %v330_v20 }
  0x96   : > { %v371_v43 = vadd.f32 %v358_v19, %v347_v37 }
  0x97   : > { %v340_v21 = vpop.permute.xlu0 %339 }
  0x98   : > { %v380_v22 = vpop.permute.xlu1 %379  ;;  %v349_v5 = vmul.f32 %v345_v33, %v340_v21  ;;  %v314_v21 = vld [vmem:[%s1275_s3 + $0x8] sm:$0xff] }
  0x99   : > { %v395_v41 = vmul.f32 %v393_v34, %v380_v22 }
  0x9b   : > { %v363_v24 = vpop.permute.xlu0 %362  ;;  %v399_v49 = vadd.f32 %v395_v41, %v371_v43 }
  0x9d   : > { %v335_v25 = vpop.permute.xlu1 %334 }
  0x9e   : > { %v348_v59 = vmul.f32 %v345_v33, %v335_v25  ;;  %v1035_v25 = vmov -inf  }
  0x9f   : > { %302 = vst.msk [vmem:[#allocation2 + $0x8] sm:$0xff] %vm300_vm1, %v1035_v25  ;;  %301 = vst.msk [vmem:[#allocation2] sm:$0xff] %vm300_vm1, %v1035_v25 }
  0xa0   : > { %v376_v28 = vpop.permute.xlu0 %375  ;;  %v372_v1 = vadd.f32 %v363_v24, %v348_v59  ;;  %v316_v24 = vld [vmem:[%s1275_s3 + $0x18] sm:$0xff]  ;;  %303 = vst.msk [vmem:[#allocation2 + $0x10] sm:$0xff] %vm300_vm1, %v1035_v25  ;;  %304 = vst.msk [vmem:[#allocation2 + $0x18] sm:$0xff] %vm300_vm1, %v1035_v25 }
  0xa1   : > { %v394_v44 = vmul.f32 %v393_v34, %v376_v28 }
  0xa2   : > { %v404_v27 = vpop.permute.xlu1 %403 }
  0xa3   : > { %v398_v51 = vadd.f32 %v394_v44, %v370_v48  ;;  %v422_v52 = vmul.f32 %v421_v42, %v404_v27  ;;  %v619_v48 = vld [vmem:[%s1277_s5 + $0x10] sm:$0xff] }
  0xa4   : > { %v384_v36 = vpop.permute.xlu0 %383 }
  0xa5   : > { %v426_v56 = vadd.f32 %v422_v52, %v398_v51  ;;  %v396_v61 = vmul.f32 %v393_v34, %v384_v36  ;;  %v620_v51 = vld [vmem:[%s1277_s5 + $0x18] sm:$0xff]  ;;  %v1038_v52 = vmov 0.0  }
  0xa6   : > { %v408_v32 = vpop.permute.xlu1 %407  ;;  %857 = vmatprep.mubr.msk.f32.mxu1 %vm1037_vm3, %v1038_v52 }
  0xa7   : > { %v423_v45 = vmul.f32 %v421_v42, %v408_v32  ;;  %v400_v6 = vadd.f32 %v396_v61, %v372_v1  ;;  %v600_v61 = vld [vmem:[#allocation2 + $0x18] sm:$0xff] }
  0xa9   : > { %v436_v47 = vpop.permute.xlu0 %435  ;;  %v427_v53 = vadd.f32 %v423_v45, %v399_v49  ;;  %v1036_v49 = vmov 0.0|0.0  }
  0xaa   : > { %v451_v54 = vmul.f32 %v449_v46, %v436_v47  ;;  %v618_v47 = vld [vmem:[%s1277_s5 + $0x8] sm:$0xff]  ;;  %868 = vmatprep.subr.bf16.mxu1 %v1036_v49 }
  0xab   : > { %v368_v39 = vpop.permute.xlu1 %367 }
  0xac   : > { %v455_v57 = vadd.f32 %v451_v54, %v427_v53  ;;  %v373_v9 = vadd.f32 %v368_v39, %v349_v5  ;;  %v872_v53 = vpack.c.bf16 %v620_v51, %v619_v48  ;;  %v598_v54 = vld [vmem:[#allocation2 + $0x8] sm:$0xff] }
  0xad   : > { %v440_v4 = vpop.permute.xlu0 %439 }
  0xae   : > { %v459_v62 = vmax.f32 %v455_v57, 0.0  ;;  %v452_v11 = vmul.f32 %v449_v46, %v440_v4 }
  0xb0   : > { %v388_v50 = vpop.permute.xlu1 %387 }
  0xb1   : > { %v397_v7 = vmul.f32 %v393_v34, %v388_v50 }
  0xb2   : > { %v465_v27 = vpop.permute.xlu0 %464 }
  0xb3   : > { %v401_v13 = vadd.f32 %v397_v7, %v373_v9  ;;  %v621_v7 = vld [vmem:[%s1278_s6] sm:$0x1] }
  0xb5   : > { %v432_v55 = vpop.permute.xlu1 %431 }
  0xb6   : > { %v450_v58 = vmul.f32 %v449_v46, %v432_v55  ;;  %v480_v34 = vpop.permute.xlu0 %479  ;;  %v597_v55 = vld [vmem:[#allocation2] sm:$0xff] }
  0xb8   : > { %v454_v60 = vadd.f32 %v450_v58, %v426_v56 }
  0xba   : > { %v458_v63 = vmax.f32 %v454_v60, 0.0  ;;  %v412_v0 = vpop.permute.xlu1 %411  ;;  %v599_v60 = vld [vmem:[#allocation2 + $0x10] sm:$0xff] }
  0xbb   : > { %v424_v2 = vmul.f32 %v421_v42, %v412_v0 }
  0xbc   : > { %v860_v3 = vpack.c.bf16 %v459_v62, %v458_v63 }
  0xbd   : > { %v428_v10 = vadd.f32 %v424_v2, %v400_v6 }
  0xbe   : > { %v416_v8 = vpop.permute.xlu1 %415  ;;  %861 = vmatprep.subr.bf16.mxu0 %v860_v3 }
  0xbf   : > { %863 = vmatpush3.bf16.msra.mxu0 %v860_v3  ;;  %v425_v12 = vmul.f32 %v421_v42, %v416_v8  ;;  %v456_v15 = vadd.f32 %v452_v11, %v428_v10 }
  0xc1   : > { %v429_v16 = vadd.f32 %v425_v12, %v401_v13  ;;  %v460_v19 = vmax.f32 %v456_v15, 0.0 }
  0xc3   : > { %v444_v14 = vpop.permute.xlu1 %443 }
  0xc4   : > { %v453_v17 = vmul.f32 %v449_v46, %v444_v14  ;;  %v617_v46 = vld [vmem:[%s1277_s5] sm:$0xff] }
  0xc5   : > { %v869_v50 = vpack.c.bf16 %v618_v47, %v617_v46 }
  0xc6   : > { %v457_v18 = vadd.f32 %v453_v17, %v429_v16 }
  0xc7   : > { %870 = vmatpush3.bf16.msra.mxu1 %v869_v50 }
  0xc8   : > { %v461_v20 = vmax.f32 %v457_v18, 0.0  ;;  %v470_v26 = vpop.permute.xlu1 %469  ;;  %871 = vmatprep.subr.bf16.mxu1 %v1036_v49 }
  0xca   : > { %v864_v22 = vpack.c.bf16 %v461_v20, %v460_v19 }
  0xcb   : > { %873 = vmatpush3.bf16.msra.mxu1 %v872_v53 }
  0xcc   : > { %865 = vmatprep.subr.bf16.mxu0 %v864_v22  ;;  %v475_v33 = vpop.permute.xlu1 %474 }
  0xcd   : > { %867 = vmatpush3.bf16.msra.mxu0 %v864_v22 }
  0xd0   : > { %844 = vmatmul.mubr.msk.f32.vlgmr.msra.gmra.mrb[0].mxu0 %vm482_vm0, %v314_v21 }
  0xd1   : > { %846 = vmatprep.mubr.msk.f32.mxu0 %vm482_vm0, %v315_v23 }
  0xd4   : > { %847 = vmatmul.mubr.msk.f32.gmra.mrb[2].mxu0 %vm482_vm0, %v316_v24 }
 0x1a3   : > { %v845_v28 = vpop.f32.mrb[0].mxu0 }
 0x1a4   : > { %v567_v29 = vadd.f32 %v845_v28, %v470_v26  ;;  %v561_v30 = vpop.f32.mrb[1].mxu0 }
 0x1a5   : > { %v562_v31 = vadd.f32 %v561_v30, %v465_v27 }
 0x1a6   : > { %v581_v32 = vmax.f32 %v567_v29, 0.0 }
 0x1a7   : > { %v580_v35 = vmax.f32 %v562_v31, 0.0  ;;  %v848_v36 = vpop.f32.mrb[2].mxu0 }
 0x1a8   : > { %v577_v37 = vadd.f32 %v848_v36, %v480_v34  ;;  %v571_v38 = vpop.f32.mrb[3].mxu0  ;;  %v588_v39 = vsel %vm584_vm2, %v581_v32, -inf }
 0x1a9   : > { %v572_v40 = vadd.f32 %v571_v38, %v475_v33  ;;  %589 = vmax.xlane.f32.xlu0 %v588_v39  ;;  %v585_v41 = vsel %vm584_vm2, %v580_v35, -inf }
 0x1aa   : > { %v583_v42 = vmax.f32 %v577_v37, 0.0  ;;  %586 = vmax.xlane.f32.xlu1 %v585_v41 }
 0x1ab   : > { %v582_v43 = vmax.f32 %v572_v40, 0.0 }
 0x1ac   : > { %v594_v44 = vsel %vm584_vm2, %v583_v42, -inf }
 0x1ad   : > { %v591_v45 = vsel %vm584_vm2, %v582_v43, -inf }
 0x1ae   : > { %592 = vmax.xlane.f32.xlu0 %v591_v45  ;;  %595 = vmax.xlane.f32.xlu1 %v594_v44 }
 0x236   : > { %v590_v56 = vpop.xlane.xlu0 %589 }
 0x237   : > { %v602_v57 = vmax.f32 %v598_v54, %v590_v56  ;;  %v587_v58 = vpop.xlane.xlu1 %586 }
 0x238   : > { %v601_v59 = vmax.f32 %v597_v55, %v587_v58 }
 0x239   : > { %607 = vst.msk [vmem:[#allocation2 + $0x8] sm:$0xff] %vm300_vm1, %v602_v57 }
 0x23a   : > { %606 = vst.msk [vmem:[#allocation2] sm:$0xff] %vm300_vm1, %v601_v59 }
 0x23b   : > { %v593_v62 = vpop.xlane.xlu0 %592  ;;  %v596_v63 = vpop.xlane.xlu1 %595 }
 0x23c   : > { %v603_v0 = vmax.f32 %v599_v60, %v593_v62  ;;  %v604_v1 = vmax.f32 %v600_v61, %v596_v63 }
 0x23e   : > { %608 = vst.msk [vmem:[#allocation2 + $0x10] sm:$0xff] %vm300_vm1, %v603_v0  ;;  %609 = vst.msk [vmem:[#allocation2 + $0x18] sm:$0xff] %vm300_vm1, %v604_v1 }
 0x240   : > { %v614_v3 = vld [vmem:[#allocation2 + $0x8] sm:$0xff] }
 0x241   : > { %v613_v2 = vld [vmem:[#allocation2] sm:$0xff] }
 0x242   : > { %622 = vxpose.xlu0.b32.start [1/4] (short) (narrow) %v613_v2, 8 }
 0x245   : > { %v615_v4 = vld [vmem:[#allocation2 + $0x10] sm:$0xff]  ;;  %v616_v5 = vld [vmem:[#allocation2 + $0x18] sm:$0xff] }
 0x246   : > { %623 = vxpose.xlu0.b32.cont [2/4] (short) (narrow) %v614_v3, 8 }
 0x24a   : > { %624 = vxpose.xlu0.b32.cont [3/4] (short) (narrow) %v615_v4, 8 }
 0x24e   : > { %625 = vxpose.xlu0.b32.end [4/4] (short) (narrow) %v616_v5, 8 }
 0x2c2   : > { %v638_v6 = vpop.trf.xlu0 }
 0x2c3   : > { %858 = vmatmul.mubr.msk.f32.vlgmr.msra.gmra.mrb[0].mxu1 %vm482_vm0, %v638_v6 }
 0x396   : > { %v723_v8 = vpop.f32.mrb[0].mxu1 }
 0x397   : > { %v724_v9 = vadd.f32 %v723_v8, %v621_v7  ;;  %v859_v10 = vpop.f32.mrb[1].mxu1 }
 0x399   : > { %728 = vst.msk [vmem:[%s288_s8] sm:$0x1] %vm727_vm4, %v724_v9 }
 0x39a   : > { %964 = shalt.err (!%p961_p5)
}
 0x39b   : > { %s965_s21 = scalar_lea.hbm %s1225_s16, 16  ;;  %s969_s30 = scalar_lea.hbm %s1279_s7, 32 }
 0x39c   : > { %p966_p6 = scmp.ne.s32.totalorder %s1225_s16, %s965_s21  ;;  %p970_p10 = scmp.lt.u32.totalorder %s1225_s16, %s1279_s7 }
 0x39d   : > { %p971_p11 = scmp.lt.u32.totalorder %s969_s30, %s965_s21  ;;  %p973_p13 = scmp.lt.u32.totalorder %s965_s21, %s1225_s16 }
 0x39e   : > { %p967_p7 = pnand %p966_p6, %p1120_p4 }
 0x39f   : > { %p972_p12 = por %p971_p11, %p970_p10 }
 0x3a0   : > { %p968_p9 = pneg %p967_p7 }
 0x3a1   : > { %p974_p0 = por %p973_p13, %p972_p12 }
 0x3a3   : > { %p975_p1 = pnand %p974_p0, %p968_p9 }
 0x3a5   : > { %978 = shalt.err (!%p975_p1)
}
 0x3a6   : > { %874 = dma.vmem_to_hbm [thread:$0]  (%p1120_p4), %s1227_s10, 16, %s1225_s16, %s730_s17  }
 0x3a7 PF: > { %p880_p2 = scmp.ge.s32.totalorder %s1029_s29, 2  ;;  %s754_s15 = sand.u32 1, %s1009_s24  }
 0x3a8   : > { %s755_s18 = scalar_lea.sflag [#allocation4], %s754_s15 }
 0x3a9   : > { %p877_p3 = pnand %p880_p2, %p1127_p8 }
 0x3ab   : > { %1004 = dma.done.wait (!%p877_p3), %s755_s18, 16  }
 0x3ac   : > { %1006 = vsyncadd (!%p877_p3), %s755_s18, 4294967280  ;;  %s20_s29 = sadd.s32 1, %s1029_s29   ;;  %s1282_s24 = smov %s1013_s25 }
 0x3ad   : > { %p17_p5 = scmp.ge.s32.totalorder %s20_s29, 4   ;;  %s1283_s25 = smov %s1017_s26 }
 0x3ae   : > { %s1284_s26 = smov %s1133_s14  ;;  %s1285_s27 = smov %s1025_s28 }
 0x3af   : > { %s1286_s28 = smov %s1288_s9  ;;  %19 = sbr.rel (!%p17_p5) target bundleno = 4 (0x4), region = 91 }
 0x3b6   :  { %759 = vsyncpa [#allocation4], 1 }
 0x3b7   :  { %761 = vsyncpa [#allocation4 + $0x1], 1 }

</bundles_post_ra>
